<compile_context>
chip_gen: v7x
topology: tpu7x:2x2x1
jax: 0.10.0
libtpu: 0.0.40
codegen_flags: <defaults>
</compile_context>

<pallas_src>
import jax
import jax.numpy as jnp
from jax.experimental import pallas as pl
from jax.experimental.pallas import tpu as pltpu


def _round_up(x, m):
    return ((x + m - 1) // m) * m


def _pair_sqdist_kernel(u_ref, p_ref, n_ref, sp_ref, sn_ref, out_ref):
    """One batch tile.

    u/p/n  : (rows, W)   packed embeddings, P batch elements per row.
    sp/sn  : (W, Csel)   constant 0/1 group-sum selectors (VMEM-resident).
    out    : (rows, 2P)  cols [0,P) = pos distances, cols [P,2P) = neg.
    """
    c_out = out_ref.shape[1]
    u = u_ref[...]
    dp = u - p_ref[...]
    dn = u - n_ref[...]
    # Grouped per-batch-element reduction on the (otherwise idle) MXU: each
    # 0/1 selector column sums one H-lane group into one output column.
    acc = jnp.dot(dp * dp, sp_ref[...],
                  precision=jax.lax.Precision.HIGHEST,
                  preferred_element_type=jnp.float32)
    acc = acc + jnp.dot(dn * dn, sn_ref[...],
                        precision=jax.lax.Precision.HIGHEST,
                        preferred_element_type=jnp.float32)
    out_ref[...] = acc[:, :c_out]


def _packing(H):
    """Pack factor P and packed row width W = P * H."""
    if H % 128 == 0:
        return 1, H                      # already lane-dense
    if 128 % H == 0:
        return 128 // H, 128             # e.g. H=32 -> 4 elements per 128 lanes
    # TODO(synk): lane-padded fallback for H that does not divide 128.
    return 1, H


def _choose_rows(total_rows, w):
    """(rows per grid block, #blocks).  Budget ~20 MiB of VMEM per step."""
    w_pad = _round_up(w, 128)
    # double-buffered inputs (3) + temporaries (dp^2, dn^2, 2 matmul results)
    # + double-buffered lane-padded output block.
    bytes_per_row = (3 * 2 + 4) * 4 * w_pad + 2 * 4 * 128
    r_max = (20 * 1024 * 1024) // bytes_per_row
    r_max = max(64, (r_max // 8) * 8)
    if total_rows < 64:                  # tiny batch: one sublane-aligned block
        return _round_up(max(total_rows, 1), 8), 1
    # At least two blocks so both v7x TensorCores get work on medium batches.
    nblk = max(2, pl.cdiv(total_rows, r_max))
    rows = _round_up(pl.cdiv(total_rows, nblk), 8)
    nblk = pl.cdiv(total_rows, rows)
    return rows, nblk


def hyperbolic_forward(user_emb, pos_emb, neg_emb):
    """Fused (pos_dist, neg_dist) squared-distance forward.  Inputs [B, H] f32."""
    B, H = user_emb.shape
    P, W = _packing(H)

    # Pad the batch so it packs into whole rows of W = P*H lanes.
    B_p = _round_up(B, P)
    if B_p != B:
        pad = ((0, B_p - B), (0, 0))
        user_emb = jnp.pad(user_emb, pad)
        pos_emb = jnp.pad(pos_emb, pad)
        neg_emb = jnp.pad(neg_emb, pad)

    rows_total = B_p // P
    rows_blk, nblk = _choose_rows(rows_total, W)
    rows_pad = rows_blk * nblk

    def pack(x):
        x = x.reshape(rows_total, W)     # contiguous reshape: free, no copy
        if rows_pad != rows_total:
            x = jnp.pad(x, ((0, rows_pad - rows_total), (0, 0)))
        return x

    u_p, p_p, n_p = pack(user_emb), pack(pos_emb), pack(neg_emb)

    # Constant 0/1 group-sum selectors (W, Csel): column c < P sums the H lanes
    # of batch element c of the row (pos); column P + c does the same for neg.
    csel = max(128, _round_up(2 * P, 128))
    lane_grp = jnp.arange(W) // H                       # (W,)
    col = jnp.arange(csel)                              # (Csel,)
    sel_pos = ((col[None, :] < P) &
               (lane_grp[:, None] == col[None, :])).astype(jnp.float32)
    sel_neg = ((col[None, :] >= P) & (col[None, :] < 2 * P) &
               (lane_grp[:, None] == col[None, :] - P)).astype(jnp.float32)

    c_out = 2 * P
    blk_in = pl.BlockSpec((rows_blk, W), lambda i: (i, 0))
    blk_sel = pl.BlockSpec((W, csel), lambda i: (0, 0))  # resident constant

    cost = pl.CostEstimate(
        flops=6 * B_p * H,
        transcendentals=0,
        bytes_accessed=3 * B_p * H * 4 + 2 * B_p * 4,
    )

    out = pl.pallas_call(
        _pair_sqdist_kernel,
        out_shape=jax.ShapeDtypeStruct((rows_pad, c_out), jnp.float32),
        grid=(nblk,),
        in_specs=[blk_in, blk_in, blk_in, blk_sel, blk_sel],
        out_specs=pl.BlockSpec((rows_blk, c_out), lambda i: (i, 0)),
        compiler_params=pltpu.CompilerParams(
            dimension_semantics=("parallel",),
            vmem_limit_bytes=32 * 1024 * 1024,  # explicit: v5e default is 16 MiB
        ),
        cost_estimate=cost,
    )(u_p, p_p, n_p, sel_pos, sel_neg)

    pos_dist = out[:, :P].reshape(-1, 1)[:B]
    neg_dist = out[:, P:c_out].reshape(-1, 1)[:B]
    return pos_dist, neg_dist


def reference_forward(user_emb, pos_emb, neg_emb):
    pos_dist = jnp.sum((user_emb - pos_emb) ** 2, axis=1, keepdims=True)
    neg_dist = jnp.sum((user_emb - neg_emb) ** 2, axis=1, keepdims=True)
    return pos_dist, neg_dist


if __name__ == "__main__":
    num_users, num_items, hidden_dim = 64, 128, 32

    key = jax.random.PRNGKey(0)
    k_user, k_item = jax.random.split(key, 2)

    # Embedding tables initialized like the module: normal(0, 0.1), float32.
    user_mu = 0.1 * jax.random.normal(k_user, (num_users, hidden_dim), jnp.float32)
    item_mu = 0.1 * jax.random.normal(k_item, (num_items, hidden_dim), jnp.float32)

    fwd = jax.jit(hyperbolic_forward)

    # batch=8 exercises the tiny single-block path; batch=512 the packed
    # multi-block (2 parallel blocks) path.
    for batch in (8, 512):
        user_idx = jnp.arange(batch) % num_users
        pos_idx = (jnp.arange(batch) * 3) % num_items
        neg_idx = (jnp.arange(batch) * 7 + 1) % num_items
        user_emb = user_mu[user_idx]
        pos_emb = item_mu[pos_idx]
        neg_emb = item_mu[neg_idx]

        pos_dist, neg_dist = jax.block_until_ready(fwd(user_emb, pos_emb, neg_emb))
        ref_pos, ref_neg = reference_forward(user_emb, pos_emb, neg_emb)

        assert pos_dist.shape == (batch, 1), pos_dist.shape
        assert neg_dist.shape == (batch, 1), neg_dist.shape
        assert jnp.allclose(pos_dist, ref_pos, atol=1e-5, rtol=1e-5)
        assert jnp.allclose(neg_dist, ref_neg, atol=1e-5, rtol=1e-5)

    print("KERNEL_OK")
</pallas_src>

<mosaic_0001>
module attributes {stable_mosaic.version = 11 : i64} {
  func.func @_pair_sqdist_kernel(%arg0: i32, %arg1: memref<8x128xf32, #tpu.memory_space<vmem>>, %arg2: memref<8x128xf32, #tpu.memory_space<vmem>>, %arg3: memref<8x128xf32, #tpu.memory_space<vmem>>, %arg4: memref<128x128xf32, #tpu.memory_space<vmem>>, %arg5: memref<128x128xf32, #tpu.memory_space<vmem>>, %arg6: memref<8x8xf32, #tpu.memory_space<vmem>>) attributes {dimension_semantics = [#tpu.dimension_semantics<parallel>], iteration_bounds = array<i64: 1>, scalar_prefetch = 0 : i64, scratch_operands = 0 : i64, tpu.core_type = #tpu.core_type<tc>, window_params = [{transform_indices = @transform_0, window_bounds = array<i64: 8, 128>}, {transform_indices = @transform_1, window_bounds = array<i64: 8, 128>}, {transform_indices = @transform_2, window_bounds = array<i64: 8, 128>}, {pipeline_mode = #tpu.pipeline_mode<synchronous>, transform_indices = @transform_3, window_bounds = array<i64: 128, 128>}, {pipeline_mode = #tpu.pipeline_mode<synchronous>, transform_indices = @transform_4, window_bounds = array<i64: 128, 128>}, {transform_indices = @transform_5, window_bounds = array<i64: 8, 8>}]} {
    %c0 = arith.constant 0 : index
    %c0_0 = arith.constant 0 : index
    %0 = vector.load %arg1[%c0, %c0_0] : memref<8x128xf32, #tpu.memory_space<vmem>>, vector<8x128xf32>
    %c0_1 = arith.constant 0 : index
    %c0_2 = arith.constant 0 : index
    %1 = vector.load %arg2[%c0_1, %c0_2] : memref<8x128xf32, #tpu.memory_space<vmem>>, vector<8x128xf32>
    %2 = arith.subf %0, %1 : vector<8x128xf32>
    %c0_3 = arith.constant 0 : index
    %c0_4 = arith.constant 0 : index
    %3 = vector.load %arg3[%c0_3, %c0_4] : memref<8x128xf32, #tpu.memory_space<vmem>>, vector<8x128xf32>
    %4 = arith.subf %0, %3 : vector<8x128xf32>
    %5 = arith.mulf %2, %2 : vector<8x128xf32>
    %c0_5 = arith.constant 0 : index
    %c0_6 = arith.constant 0 : index
    %6 = vector.load %arg4[%c0_5, %c0_6] : memref<128x128xf32, #tpu.memory_space<vmem>>, vector<128x128xf32>
    %cst = arith.constant dense<0.000000e+00> : vector<8x128xf32>
    %7 = tpu.matmul %5, %6, %cst {dimension_numbers = #tpu.dot_dimension_numbers<[1], [0], [0], [1], [0, 0, 1, 1], [], []>, precision = #tpu.contract_precision<fp32>} : vector<8x128xf32>, vector<128x128xf32>, vector<8x128xf32> -> vector<8x128xf32>
    %8 = arith.mulf %4, %4 : vector<8x128xf32>
    %c0_7 = arith.constant 0 : index
    %c0_8 = arith.constant 0 : index
    %9 = vector.load %arg5[%c0_7, %c0_8] : memref<128x128xf32, #tpu.memory_space<vmem>>, vector<128x128xf32>
    %cst_9 = arith.constant dense<0.000000e+00> : vector<8x128xf32>
    %10 = tpu.matmul %8, %9, %cst_9 {dimension_numbers = #tpu.dot_dimension_numbers<[1], [0], [0], [1], [0, 0, 1, 1], [], []>, precision = #tpu.contract_precision<fp32>} : vector<8x128xf32>, vector<128x128xf32>, vector<8x128xf32> -> vector<8x128xf32>
    %11 = arith.addf %7, %10 : vector<8x128xf32>
    %12 = vector.extract_strided_slice %11 {offsets = [0, 0], sizes = [8, 8], strides = [1, 1]} : vector<8x128xf32> to vector<8x8xf32>
    %c0_10 = arith.constant 0 : index
    %c0_11 = arith.constant 0 : index
    %13 = vector.load %arg6[%c0_10, %c0_11] : memref<8x8xf32, #tpu.memory_space<vmem>>, vector<8x8xf32>
    tpu.vector_store %arg6[%c0_10, %c0_11], %12 {strides = array<i32>} : memref<8x8xf32, #tpu.memory_space<vmem>>, vector<8x8xf32>,
    return
  }
  func.func @transform_0(%arg0: i32) -> (i32, i32) {
    %c0_i32 = arith.constant 0 : i32
    %c0_i32_0 = arith.constant 0 : i32
    return %arg0, %c0_i32 : i32, i32
  }
  func.func @transform_1(%arg0: i32) -> (i32, i32) {
    %c0_i32 = arith.constant 0 : i32
    %c0_i32_0 = arith.constant 0 : i32
    return %arg0, %c0_i32 : i32, i32
  }
  func.func @transform_2(%arg0: i32) -> (i32, i32) {
    %c0_i32 = arith.constant 0 : i32
    %c0_i32_0 = arith.constant 0 : i32
    return %arg0, %c0_i32 : i32, i32
  }
  func.func @transform_3(%arg0: i32) -> (i32, i32) {
    %c0_i32 = arith.constant 0 : i32
    %c0_i32_0 = arith.constant 0 : i32
    %c0_i32_1 = arith.constant 0 : i32
    return %c0_i32, %c0_i32_0 : i32, i32
  }
  func.func @transform_4(%arg0: i32) -> (i32, i32) {
    %c0_i32 = arith.constant 0 : i32
    %c0_i32_0 = arith.constant 0 : i32
    %c0_i32_1 = arith.constant 0 : i32
    return %c0_i32, %c0_i32_0 : i32, i32
  }
  func.func @transform_5(%arg0: i32) -> (i32, i32) {
    %c0_i32 = arith.constant 0 : i32
    %c0_i32_0 = arith.constant 0 : i32
    return %arg0, %c0_i32 : i32, i32
  }
}

</mosaic_0001>

<bundles_post_ra>
// kernel: hyperbolic_forward.1
= control target key start
LH: loop header
LB: loop body
LE: loop exit
PB: predicated region body
PF: predicated region fallthrough
CT: control target
= control target key end

     0   :  { %v3034_v0 = vmov 0.0|0.0   ;;  %vm2284_vm0 = vmmov 0   ;;  %v3016_v10 = vmov 0.0   ;;  %vm1341_vm1 = vcmask 64512   ;;  %s3010_s4 = inlined_call_operand.vmem [shape: f32[128,128], index: 4, kind: input, shape index: {}]   ;;  %s3011_s3 = inlined_call_operand.vmem [shape: f32[128,128], index: 3, kind: input, shape index: {}]   ;;  %s3012_s0 = inlined_call_operand.vmem [shape: f32[8,128], index: 0, kind: input, shape index: {}]   ;;  %s3013_s2 = inlined_call_operand.vmem [shape: f32[8,128], index: 2, kind: input, shape index: {}]   ;;  %s3014_s1 = inlined_call_operand.vmem [shape: f32[8,128], index: 1, kind: input, shape index: {}]   ;;  %s3015_s5 = inlined_call_operand.vmem [shape: f32[8,8], index: 5, kind: output, shape index: {}]  }
   0x1   :  { %1971 = vmatprep.subr.bf16.mxu1 %v3034_v0  ;;  %2115 = vmatprep.subr.bf16.mxu0 %v3034_v0  ;;  %v43_v1 = vld [vmem:[%s3010_s4] sm:$0xff]  ;;  %v44_v2 = vld [vmem:[%s3010_s4 + $0x8] sm:$0xff]  ;;  %v45_v8 = vld [vmem:[%s3010_s4 + $0x10] sm:$0xff] }
   0x2   :  { %v26_v3 = vld [vmem:[%s3011_s3] sm:$0xff]  ;;  %v60_v4 = vand.u32 4294901760, %v43_v1  ;;  %v63_v5 = vand.u32 4294901760, %v44_v2  ;;  %v27_v6 = vld [vmem:[%s3011_s3 + $0x8] sm:$0xff]  ;;  %v46_v9 = vld [vmem:[%s3010_s4 + $0x18] sm:$0xff]  ;;  %1583 = vmatprep.mubr.msk.f32.mxu1 %vm2284_vm0, %v3016_v10  ;;  %1793 = vmatprep.mubr.msk.f32.mxu0 %vm2284_vm0, %v3016_v10  ;;  %v66_v12 = vand.u32 4294901760, %v45_v8 }
   0x3   :  { %v701_v7 = vand.u32 4294901760, %v26_v3  ;;  %v704_v11 = vand.u32 4294901760, %v27_v6  ;;  %v69_v13 = vand.u32 4294901760, %v46_v9  ;;  %v28_v14 = vld [vmem:[%s3011_s3 + $0x10] sm:$0xff]  ;;  %v29_v15 = vld [vmem:[%s3011_s3 + $0x18] sm:$0xff]  ;;  %v47_v16 = vld [vmem:[%s3010_s4 + $0x20] sm:$0xff] }
   0x4   :  { %v2349_v17 = vpack.c.bf16 %v63_v5, %v60_v4  ;;  %v48_v18 = vld [vmem:[%s3010_s4 + $0x28] sm:$0xff]  ;;  %v30_v19 = vld [vmem:[%s3011_s3 + $0x20] sm:$0xff]  ;;  %v707_v23 = vand.u32 4294901760, %v28_v14  ;;  %v710_v24 = vand.u32 4294901760, %v29_v15  ;;  %v72_v25 = vand.u32 4294901760, %v47_v16  ;;  %v49_v26 = vld [vmem:[%s3010_s4 + $0x30] sm:$0xff] }
   0x5   :  { %v31_v20 = vld [vmem:[%s3011_s3 + $0x28] sm:$0xff]  ;;  %v2360_v21 = vpack.c.bf16 %v704_v11, %v701_v7  ;;  %v2363_v22 = vpack.c.bf16 %v69_v13, %v66_v12  ;;  %v75_v27 = vand.u32 4294901760, %v48_v18  ;;  %v713_v28 = vand.u32 4294901760, %v30_v19  ;;  %v50_v30 = vld [vmem:[%s3010_s4 + $0x38] sm:$0xff]  ;;  %v32_v31 = vld [vmem:[%s3011_s3 + $0x30] sm:$0xff] }
   0x6   :  { %3081 = vst [vmem:[#allocation2_spill] sm:$0xff] %v2349_v17  ;;  %1973 = vmatpush3.bf16.msra.mxu1 %v2349_v17  ;;  %v716_v29 = vand.u32 4294901760, %v31_v20  ;;  %v2376_v32 = vsub.f32 %v43_v1, %v60_v4  ;;  %v2378_v33 = vsub.f32 %v44_v2, %v63_v5  ;;  %v2380_v34 = vsub.f32 %v26_v3, %v701_v7  ;;  %v33_v36 = vld [vmem:[%s3011_s3 + $0x38] sm:$0xff]  ;;  %v51_v41 = vld [vmem:[%s3010_s4 + $0x40] sm:$0xff]  ;;  %v52_v42 = vld [vmem:[%s3010_s4 + $0x48] sm:$0xff] }
   0x7   :  { %3082 = vst [vmem:[#allocation3_spill] sm:$0xff] %v2360_v21  ;;  %3083 = vst [vmem:[#allocation4_spill] sm:$0xff] %v2363_v22  ;;  %2117 = vmatpush3.bf16.msra.mxu0 %v2360_v21  ;;  %1974 = vmatprep.subr.bf16.mxu1 %v3034_v0  ;;  %v2383_v35 = vpack.c.bf16 %v710_v24, %v707_v23  ;;  %v2388_v37 = vsub.f32 %v27_v6, %v704_v11  ;;  %v78_v40 = vand.u32 4294901760, %v49_v26  ;;  %v34_v47 = vld [vmem:[%s3011_s3 + $0x40] sm:$0xff]  ;;  %v35_v48 = vld [vmem:[%s3011_s3 + $0x48] sm:$0xff] }
   0x8   :  { %2118 = vmatprep.subr.bf16.mxu0 %v3034_v0  ;;  %v2390_v38 = vsub.f32 %v45_v8, %v66_v12  ;;  %v2392_v39 = vsub.f32 %v46_v9, %v69_v13  ;;  %v2401_v43 = vsub.f32 %v28_v14, %v707_v23  ;;  %v2403_v44 = vpack.c.bf16 %v75_v27, %v72_v25  ;;  %v53_v53 = vld [vmem:[%s3010_s4 + $0x50] sm:$0xff]  ;;  %v54_v58 = vld [vmem:[%s3010_s4 + $0x58] sm:$0xff]  ;;  %v55_v2 = vld [vmem:[%s3010_s4 + $0x60] sm:$0xff] }
   0x9   :  { %3084 = vst [vmem:[#allocation5_spill] sm:$0xff] %v2383_v35  ;;  %v81_v45 = vand.u32 4294901760, %v50_v30  ;;  %v719_v46 = vand.u32 4294901760, %v32_v31  ;;  %v2412_v49 = vsub.f32 %v29_v15, %v710_v24  ;;  %v2415_v50 = vsub.f32 %v47_v16, %v72_v25  ;;  %v36_v59 = vld [vmem:[%s3011_s3 + $0x50] sm:$0xff]  ;;  %v37_v60 = vld [vmem:[%s3011_s3 + $0x58] sm:$0xff]  ;;  %v56_v3 = vld [vmem:[%s3010_s4 + $0x68] sm:$0xff] }
   0xa   :  { %1976 = vmatpush3.bf16.msra.mxu1 %v2363_v22  ;;  %3085 = vst [vmem:[#allocation6_spill] sm:$0xff] %v2403_v44  ;;  %v2417_v51 = vpack.c.bf16 %v716_v29, %v713_v28  ;;  %v722_v52 = vand.u32 4294901760, %v33_v36  ;;  %v2423_v54 = vsub.f32 %v48_v18, %v75_v27  ;;  %v2425_v55 = vsub.f32 %v30_v19, %v713_v28  ;;  %v38_v13 = vld [vmem:[%s3011_s3 + $0x60] sm:$0xff]  ;;  %v2463_v14 = vld [vmem:[%s3011_s3 + $0x68] sm:$0xff] }
   0xb   :  { %2120 = vmatpush3.bf16.msra.mxu0 %v2383_v35  ;;  %1977 = vmatprep.subr.bf16.mxu1 %v3034_v0  ;;  %v84_v56 = vand.u32 4294901760, %v51_v41  ;;  %v87_v57 = vand.u32 4294901760, %v52_v42  ;;  %v2436_v61 = vsub.f32 %v31_v20, %v716_v29  ;;  %v2438_v62 = vsub.f32 %v49_v26, %v78_v40 }
   0xc   :  { %3086 = vst [vmem:[#allocation7_spill] sm:$0xff] %v2417_v51  ;;  %2121 = vmatprep.subr.bf16.mxu0 %v3034_v0  ;;  %v725_v63 = vand.u32 4294901760, %v34_v47  ;;  %v728_v1 = vand.u32 4294901760, %v35_v48  ;;  %v2447_v4 = vpack.c.bf16 %v81_v45, %v78_v40  ;;  %v2449_v5 = vsub.f32 %v50_v30, %v81_v45  ;;  %v20_v30 = vld [vmem:[%s3012_s0] sm:$0xff]  ;;  %v2506_v45 = vld [vmem:[%s3010_s4 + $0x78] sm:$0xff] }
   0xd   :  { %v2451_v6 = vpack.c.bf16 %v722_v52, %v719_v46  ;;  %v2453_v7 = vsub.f32 %v32_v31, %v719_v46  ;;  %v90_v8 = vand.u32 4294901760, %v53_v53  ;;  %v93_v9 = vand.u32 4294901760, %v54_v58  ;;  %v23_v31 = vld [vmem:[%s3013_s2] sm:$0xff]  ;;  %v2511_v46 = vld [vmem:[%s3011_s3 + $0x70] sm:$0xff] }
   0xe   :  { %1979 = vmatpush3.bf16.msra.mxu1 %v2403_v44  ;;  %3087 = vst [vmem:[#allocation8_spill] sm:$0xff] %v2447_v4  ;;  %v731_v11 = vand.u32 4294901760, %v36_v59  ;;  %v734_v12 = vand.u32 4294901760, %v37_v60  ;;  %v2466_v15 = vsub.f32 %v33_v36, %v722_v52  ;;  %v2468_v16 = vpack.c.bf16 %v87_v57, %v84_v56 }
   0xf   :  { %3088 = vst [vmem:[#allocation9_spill] sm:$0xff] %v2451_v6  ;;  %2123 = vmatpush3.bf16.msra.mxu0 %v2417_v51  ;;  %1980 = vmatprep.subr.bf16.mxu1 %v3034_v0  ;;  %v96_v18 = vand.u32 4294901760, %v55_v2  ;;  %v99_v19 = vand.u32 4294901760, %v56_v3  ;;  %v2470_v20 = vsub.f32 %v51_v41, %v84_v56  ;;  %v2472_v23 = vsub.f32 %v52_v42, %v87_v57  ;;  %v2501_v42 = vld [vmem:[%s3010_s4 + $0x70] sm:$0xff]  ;;  %v2525_v56 = vld [vmem:[%s3011_s3 + $0x78] sm:$0xff] }
  0x10   :  { %2124 = vmatprep.subr.bf16.mxu0 %v3034_v0  ;;  %3089 = vst [vmem:[#allocation10_spill] sm:$0xff] %v2468_v16  ;;  %v2474_v24 = vpack.c.bf16 %v728_v1, %v725_v63  ;;  %v2476_v25 = vsub.f32 %v34_v47, %v725_v63  ;;  %v2479_v26 = vsub.f32 %v35_v48, %v728_v1  ;;  %v737_v28 = vand.u32 4294901760, %v38_v13 }
  0x11   :  { %v2481_v27 = vpack.c.bf16 %v93_v9, %v90_v8  ;;  %v3018_v29 = vand.u32 4294901760, %v2463_v14  ;;  %v2492_v36 = vsub.f32 %v53_v53, %v90_v8  ;;  %v2494_v40 = vsub.f32 %v54_v58, %v93_v9 }
  0x12   :  { %3090 = vst [vmem:[#allocation11_spill] sm:$0xff] %v2474_v24  ;;  %1982 = vmatpush3.bf16.msra.mxu1 %v2447_v4  ;;  %v2496_v41 = vpack.c.bf16 %v734_v12, %v731_v11  ;;  %v2514_v47 = vsub.f32 %v36_v59, %v731_v11  ;;  %v2516_v48 = vsub.f32 %v37_v60, %v734_v12  ;;  %v3019_v63 = vand.u32 4294901760, %v2376_v32  ;;  %v21_v59 = vld [vmem:[%s3014_s1] sm:$0xff] }
  0x13   :  { %3091 = vst [vmem:[#allocation12_spill] sm:$0xff] %v2481_v27  ;;  %2126 = vmatpush3.bf16.msra.mxu0 %v2451_v6  ;;  %1983 = vmatprep.subr.bf16.mxu1 %v3034_v0  ;;  %v2518_v52 = vpack.c.bf16 %v99_v19, %v96_v18  ;;  %v2520_v53 = vsub.f32 %v55_v2, %v96_v18  ;;  %v3021_v1 = vand.u32 4294901760, %v2378_v33  ;;  %v3024_v2 = vand.u32 4294901760, %v2501_v42 }
  0x14   :  { %3092 = vst [vmem:[#allocation13_spill] sm:$0xff] %v2496_v41  ;;  %2127 = vmatprep.subr.bf16.mxu0 %v3034_v0  ;;  %v2527_v57 = vsub.f32 %v56_v3, %v99_v19  ;;  %v24_v58 = vsub.f32 %v20_v30, %v23_v31  ;;  %v2537_v60 = vpack.c.bf16 %v3018_v29, %v737_v28  ;;  %v3022_v3 = vand.u32 4294901760, %v2506_v45 }
  0x15   :  { %3093 = vst [vmem:[#allocation14_spill] sm:$0xff] %v2518_v52  ;;  %v154_v12 = vsub.f32 %v2376_v32, %v3019_v63  ;;  %v3020_v18 = vand.u32 4294901760, %v2380_v34  ;;  %v161_v19 = vsub.f32 %v2378_v33, %v3021_v1  ;;  %v22_v31 = vsub.f32 %v20_v30, %v21_v59 }
  0x16   :  { %1985 = vmatpush3.bf16.msra.mxu1 %v2468_v16  ;;  %3094 = vst [vmem:[#allocation15_spill] sm:$0xff] %v2537_v60  ;;  %v42_v11 = vmul.f32 %v24_v58, %v24_v58  ;;  %v3023_v10 = vand.u32 4294901760, %v2388_v37  ;;  %v3025_v29 = vand.u32 4294901760, %v2390_v38  ;;  %v2555_v8 = vsub.f32 %v38_v13, %v737_v28 }
  0x17   :  { %2129 = vmatpush3.bf16.msra.mxu0 %v2474_v24  ;;  %1986 = vmatprep.subr.bf16.mxu1 %v3034_v0  ;;  %v795_v63 = vsub.f32 %v2380_v34, %v3020_v18  ;;  %v2568_v30 = vpack.c.bf16 %v3022_v3, %v3024_v2  ;;  %v25_v59 = vmul.f32 %v22_v31, %v22_v31  ;;  %v3096_v18 = vand.u32 4294901760, %v2511_v46 }
  0x18   :  { %2130 = vmatprep.subr.bf16.mxu0 %v3034_v0  ;;  %v2557_v58 = vand.u32 4294901760, %v42_v11  ;;  %v802_v13 = vsub.f32 %v2388_v37, %v3023_v10  ;;  %v168_v28 = vsub.f32 %v2390_v38, %v3025_v29  ;;  %v3097_v1 = vand.u32 4294901760, %v2525_v56 }
  0x19   :  { %3095 = vst [vmem:[#allocation16_spill] sm:$0xff] %v2568_v30  ;;  %v3100_v3 = vand.u32 4294901760, %v2392_v39  ;;  %v3036_v2 = vand.u32 4294901760, %v2401_v43  ;;  %v155_v29 = vand.u32 4294901760, %v154_v12  ;;  %v796_v24 = vand.u32 4294901760, %v795_v63 }
  0x1a   :  { %1988 = vmatpush3.bf16.msra.mxu1 %v2481_v27  ;;  %v2582_v9 = vpack.c.bf16 %v3097_v1, %v3096_v18  ;;  %v2585_v31 = vsub.f32 %v42_v11, %v2557_v58  ;;  %v2592_v27 = vand.u32 4294901760, %v25_v59  ;;  %v803_v1 = vand.u32 4294901760, %v802_v13 }
  0x1b   :  { %2132 = vmatpush3.bf16.msra.mxu0 %v2496_v41  ;;  %1989 = vmatprep.subr.bf16.mxu1 %v3034_v0  ;;  %v175_v10 = vsub.f32 %v2392_v39, %v3100_v3  ;;  %v162_v41 = vand.u32 4294901760, %v161_v19  ;;  %v809_v11 = vsub.f32 %v2401_v43, %v3036_v2  ;;  %v3048_v12 = vand.u32 4294901760, %v2415_v50 }
  0x1c   :  { %3098 = vst [vmem:[#allocation17_spill] sm:$0xff] %v2582_v9  ;;  %3099 = vst [vmem:[#allocation18_spill] sm:$0xff] %v2585_v31  ;;  %2133 = vmatprep.subr.bf16.mxu0 %v3034_v0  ;;  %v3043_v16 = vand.u32 4294901760, %v2585_v31  ;;  %v2601_v3 = vsub.f32 %v25_v59, %v2592_v27  ;;  %v169_v0 = vand.u32 4294901760, %v168_v28  ;;  %v3102_v63 = vmov 0.0|0.0  }
  0x1d   :  { %v176_v2 = vand.u32 4294901760, %v175_v10  ;;  %v810_v18 = vand.u32 4294901760, %v809_v11  ;;  %v182_v19 = vsub.f32 %v2415_v50, %v3048_v12  ;;  %v3053_v4 = vand.u32 4294901760, %v2436_v61 }
  0x1e   :  { %1991 = vmatpush3.bf16.msra.mxu1 %v2518_v52  ;;  %3101 = vst [vmem:[#allocation19_spill] sm:$0xff] %v2601_v3  ;;  %v143_v13 = vsub.f32 %v2585_v31, %v3043_v16  ;;  %v3103_v52 = vand.u32 4294901760, %v2412_v49  ;;  %v3057_v16 = vand.u32 4294901760, %v2425_v55  ;;  %v3105_v51 = vand.u32 4294901760, %v2463_v14 }
  0x1f   :  { %2135 = vmatpush3.bf16.msra.mxu0 %v2537_v60  ;;  %1992 = vmatprep.subr.bf16.mxu1 %v3102_v63  ;;  %v3104_v60 = vand.u32 4294901760, %v2423_v54  ;;  %v1996_v12 = vpack.c.bf16 %v162_v41, %v155_v29  ;;  %v3107_v44 = vand.u32 4294901760, %v2601_v3  ;;  %v2140_v35 = vpack.c.bf16 %v803_v1, %v796_v24 }
  0x20   :  { %v816_v59 = vsub.f32 %v2412_v49, %v3103_v52  ;;  %2136 = vmatprep.subr.bf16.mxu0 %v3102_v63  ;;  %v144_v10 = vand.u32 4294901760, %v143_v13  ;;  %v3054_v52 = vand.u32 4294901760, %v2438_v62  ;;  %v2627_v28 = vsub.f32 %v2463_v14, %v3105_v51 }
  0x21   :  { %v189_v6 = vsub.f32 %v2423_v54, %v3104_v60  ;;  %v784_v60 = vsub.f32 %v2601_v3, %v3107_v44  ;;  %v1999_v13 = vpack.c.bf16 %v176_v2, %v169_v0  ;;  %v830_v51 = vsub.f32 %v2436_v61, %v3053_v4 }
  0x22   :  { %v817_v11 = vand.u32 4294901760, %v816_v59  ;;  %3106 = vst [vmem:[#allocation20_spill] sm:$0xff] %v2627_v28  ;;  %1994 = vmatpush3.bf16.msra.mxu1 %v2568_v30  ;;  %v823_v59 = vsub.f32 %v2425_v55, %v3057_v16  ;;  %v3056_v14 = vand.u32 4294901760, %v2449_v5  ;;  %v183_v44 = vand.u32 4294901760, %v182_v19 }
  0x23   :  { %2138 = vmatpush3.bf16.msra.mxu0 %v2582_v9  ;;  %1995 = vmatprep.subr.bf16.mxu1 %v3102_v63  ;;  %v785_v29 = vand.u32 4294901760, %v784_v60  ;;  %v196_v24 = vsub.f32 %v2438_v62, %v3054_v52  ;;  %v3055_v0 = vand.u32 4294901760, %v2453_v7  ;;  %v190_v2 = vand.u32 4294901760, %v189_v6 }
  0x24   :  { %2139 = vmatprep.subr.bf16.mxu0 %v3102_v63  ;;  %v2143_v41 = vpack.c.bf16 %v817_v11, %v810_v18  ;;  %v203_v1 = vsub.f32 %v2449_v5, %v3056_v14  ;;  %v3058_v4 = vand.u32 4294901760, %v2466_v15  ;;  %v3061_v60 = vand.u32 4294901760, %v2470_v20 }
  0x25   :  { %1584 = vmatmul.mubr.f32.vlgmr.msra.gmra.mrb[0].mxu1 %v144_v10  ;;  %v837_v19 = vsub.f32 %v2453_v7, %v3055_v0  ;;  %v3059_v52 = vand.u32 4294901760, %v2472_v23  ;;  %v3060_v10 = vand.u32 4294901760, %v2476_v25  ;;  %v824_v6 = vand.u32 4294901760, %v823_v59 }
  0x26   :  { %1997 = vmatpush3.bf16.msra.mxu1 %v1996_v12  ;;  %1794 = vmatmul.mubr.f32.vlgmr.msra.gmra.mrb[0].mxu0 %v785_v29  ;;  %v831_v18 = vand.u32 4294901760, %v830_v51  ;;  %v844_v12 = vsub.f32 %v2466_v15, %v3058_v4  ;;  %v3108_v29 = vand.u32 4294901760, %v2501_v42  ;;  %v3109_v14 = vand.u32 4294901760, %v2506_v45 }
  0x27   :  { %2141 = vmatpush3.bf16.msra.mxu0 %v2140_v35  ;;  %1998 = vmatprep.subr.bf16.mxu1 %v3102_v63  ;;  %v197_v35 = vand.u32 4294901760, %v196_v24  ;;  %v204_v59 = vand.u32 4294901760, %v203_v1  ;;  %v3110_v51 = vmov 0.0   ;;  %v2002_v4 = vpack.c.bf16 %v190_v2, %v183_v44 }
  0x28   :  { %v2665_v0 = vsub.f32 %v2501_v42, %v3108_v29  ;;  %v2670_v16 = vsub.f32 %v2506_v45, %v3109_v14  ;;  %2142 = vmatprep.subr.bf16.mxu0 %v3102_v63  ;;  %1618 = vmatprep.mubr.msk.f32.mxu1 %vm2284_vm0, %v3110_v51  ;;  %v210_v11 = vsub.f32 %v2470_v20, %v3061_v60  ;;  %v838_v14 = vand.u32 4294901760, %v837_v19 }
  0x29   :  { %v217_v42 = vsub.f32 %v2472_v23, %v3059_v52  ;;  %v851_v45 = vsub.f32 %v2476_v25, %v3060_v10  ;;  %1828 = vmatprep.mubr.msk.f32.mxu0 %vm2284_vm0, %v3110_v51  ;;  %v845_v24 = vand.u32 4294901760, %v844_v12  ;;  %v3111_v1 = vand.u32 4294901760, %v2511_v46 }
  0x2a   :  { %2000 = vmatpush3.bf16.msra.mxu1 %v1999_v13  ;;  %v2146_v52 = vpack.c.bf16 %v831_v18, %v824_v6  ;;  %v3112_v10 = vand.u32 4294901760, %v2479_v26  ;;  %v3113_v19 = vand.u32 4294901760, %v2525_v56  ;;  %v2005_v2 = vpack.c.bf16 %v204_v59, %v197_v35 }
  0x2b   :  { %v2691_v29 = vsub.f32 %v2511_v46, %v3111_v1  ;;  %2144 = vmatpush3.bf16.msra.mxu0 %v2143_v41  ;;  %2001 = vmatprep.subr.bf16.mxu1 %v3102_v63  ;;  %v3064_v46 = vand.u32 4294901760, %v2516_v48  ;;  %v3067_v41 = vand.u32 4294901760, %v2520_v53  ;;  %v211_v1 = vand.u32 4294901760, %v210_v11 }
  0x2c   :  { %v858_v60 = vsub.f32 %v2479_v26, %v3112_v10  ;;  %v2701_v12 = vsub.f32 %v2525_v56, %v3113_v19  ;;  %2145 = vmatprep.subr.bf16.mxu0 %v3102_v63  ;;  %v218_v6 = vand.u32 4294901760, %v217_v42  ;;  %v852_v18 = vand.u32 4294901760, %v851_v45 }
  0x2d   :  { %v3068_v44 = vand.u32 4294901760, %v2527_v57  ;;  %v2149_v10 = vpack.c.bf16 %v845_v24, %v838_v14  ;;  %v3114_v13 = vand.u32 4294901760, %v2492_v36  ;;  %v3115_v56 = vand.u32 4294901760, %v2494_v40 }
  0x2e   :  { %2003 = vmatpush3.bf16.msra.mxu1 %v2002_v4  ;;  %v3073_v35 = vand.u32 4294901760, %v2555_v8  ;;  %v859_v11 = vand.u32 4294901760, %v858_v60  ;;  %v3116_v59 = vand.u32 4294901760, %v2514_v47  ;;  %v872_v4 = vsub.f32 %v2516_v48, %v3064_v46 }
  0x2f   :  { %v224_v9 = vsub.f32 %v2492_v36, %v3114_v13  ;;  %v231_v19 = vsub.f32 %v2494_v40, %v3115_v56  ;;  %2147 = vmatpush3.bf16.msra.mxu0 %v2146_v52  ;;  %2004 = vmatprep.subr.bf16.mxu1 %v3102_v63  ;;  %v885_v45 = vand.u32 4294901760, %v2627_v28  ;;  %v238_v14 = vsub.f32 %v2520_v53, %v3067_v41 }
  0x30   :  { %v865_v42 = vsub.f32 %v2514_v47, %v3116_v59  ;;  %2148 = vmatprep.subr.bf16.mxu0 %v3102_v63  ;;  %v245_v52 = vsub.f32 %v2527_v57, %v3068_v44  ;;  %v879_v60 = vsub.f32 %v2555_v8, %v3073_v35  ;;  %v251_v13 = vand.u32 4294901760, %v2665_v0 }
  0x31   :  { %v886_v24 = vsub.f32 %v2627_v28, %v885_v45  ;;  %v258_v56 = vand.u32 4294901760, %v2670_v16  ;;  %v2008_v59 = vpack.c.bf16 %v218_v6, %v211_v1  ;;  %v225_v46 = vand.u32 4294901760, %v224_v9 }
  0x32   :  { %2006 = vmatpush3.bf16.msra.mxu1 %v2005_v2  ;;  %v232_v30 = vand.u32 4294901760, %v231_v19  ;;  %v892_v41 = vand.u32 4294901760, %v2691_v29  ;;  %v2152_v44 = vpack.c.bf16 %v859_v11, %v852_v18  ;;  %v866_v22 = vand.u32 4294901760, %v865_v42 }
  0x33   :  { %2150 = vmatpush3.bf16.msra.mxu0 %v2149_v10  ;;  %2007 = vmatprep.subr.bf16.mxu1 %v3102_v63  ;;  %v873_v21 = vand.u32 4294901760, %v872_v4  ;;  %v899_v35 = vand.u32 4294901760, %v2701_v12  ;;  %v239_v3 = vand.u32 4294901760, %v238_v14  ;;  %v246_v17 = vand.u32 4294901760, %v245_v52 }
  0x34   :  { %2151 = vmatprep.subr.bf16.mxu0 %v3102_v63  ;;  %v880_v31 = vand.u32 4294901760, %v879_v60  ;;  %v887_v28 = vand.u32 4294901760, %v886_v24  ;;  %v252_v2 = vsub.f32 %v2665_v0, %v251_v13  ;;  %v259_v9 = vsub.f32 %v2670_v16, %v258_v56 }
  0x35   :  { %v2011_v1 = vpack.c.bf16 %v232_v30, %v225_v46  ;;  %v893_v6 = vsub.f32 %v2691_v29, %v892_v41  ;;  %v2155_v18 = vpack.c.bf16 %v873_v21, %v866_v22  ;;  %v900_v10 = vsub.f32 %v2701_v12, %v899_v35 }
  0x36   :  { %2009 = vmatpush3.bf16.msra.mxu1 %v2008_v59  ;;  %v2014_v19 = vpack.c.bf16 %v246_v17, %v239_v3  ;;  %v2158_v11 = vpack.c.bf16 %v887_v28, %v880_v31  ;;  %v253_v42 = vand.u32 4294901760, %v252_v2  ;;  %v260_v4 = vand.u32 4294901760, %v259_v9 }
  0x37   :  { %2153 = vmatpush3.bf16.msra.mxu0 %v2152_v44  ;;  %2010 = vmatprep.subr.bf16.mxu1 %v3102_v63  ;;  %v894_v14 = vand.u32 4294901760, %v893_v6  ;;  %v3117_v52 = vand.u32 4294901760, %v2376_v32  ;;  %v3118_v30 = vand.u32 4294901760, %v2378_v33  ;;  %v3119_v44 = vand.u32 4294901760, %v2380_v34 }
  0x38   :  { %2154 = vmatprep.subr.bf16.mxu0 %v3102_v63  ;;  %v3120_v21 = vand.u32 4294901760, %v2388_v37  ;;  %v3121_v60 = vand.u32 4294901760, %v2390_v38  ;;  %v3122_v17 = vand.u32 4294901760, %v2392_v39  ;;  %v901_v3 = vand.u32 4294901760, %v900_v10 }
  0x39   :  { %v2749_v46 = vpack.c.bf16 %v3118_v30, %v3117_v52  ;;  %v3123_v28 = vand.u32 4294901760, %v2401_v43  ;;  %v3124_v24 = vand.u32 4294901760, %v2412_v49  ;;  %v3125_v2 = vand.u32 4294901760, %v2415_v50 }
  0x3a   :  { %2012 = vmatpush3.bf16.msra.mxu1 %v2011_v1  ;;  %v2755_v22 = vpack.c.bf16 %v3120_v21, %v3119_v44  ;;  %v2761_v31 = vpack.c.bf16 %v3122_v17, %v3121_v60  ;;  %v3126_v9 = vand.u32 4294901760, %v2423_v54  ;;  %v3127_v6 = vand.u32 4294901760, %v2425_v55 }
  0x3b   :  { %2156 = vmatpush3.bf16.msra.mxu0 %v2155_v18  ;;  %2013 = vmatprep.subr.bf16.mxu1 %v3102_v63  ;;  %v2768_v59 = vpack.c.bf16 %v3124_v24, %v3123_v28  ;;  %v3128_v52 = vand.u32 4294901760, %v2436_v61  ;;  %v3129_v10 = vand.u32 4294901760, %v2438_v62  ;;  %v3130_v30 = vand.u32 4294901760, %v2449_v5 }
  0x3c   :  { %v2774_v1 = vpack.c.bf16 %v3126_v9, %v3125_v2  ;;  %2157 = vmatprep.subr.bf16.mxu0 %v3102_v63  ;;  %v3132_v21 = vand.u32 4294901760, %v2453_v7  ;;  %v3133_v60 = vand.u32 4294901760, %v2466_v15  ;;  %v3135_v28 = vand.u32 4294901760, %v2470_v20 }
  0x3d   :  { %v2780_v18 = vpack.c.bf16 %v3128_v52, %v3127_v6  ;;  %v2787_v44 = vpack.c.bf16 %v3130_v30, %v3129_v10  ;;  %v3136_v24 = vand.u32 4294901760, %v2472_v23  ;;  %v3138_v9 = vand.u32 4294901760, %v2476_v25 }
  0x3e   :  { %v2793_v17 = vpack.c.bf16 %v3133_v60, %v3132_v21  ;;  %v3139_v6 = vand.u32 4294901760, %v2479_v26  ;;  %v3141_v10 = vand.u32 4294901760, %v2492_v36  ;;  %v3142_v30 = vand.u32 4294901760, %v2494_v40  ;;  %2015 = vmatpush3.bf16.msra.mxu1 %v2014_v19 }
  0x3f   :  { %3131 = vst [vmem:[#allocation21_spill] sm:$0xff] %v2787_v44  ;;  %v2799_v2 = vpack.c.bf16 %v3136_v24, %v3135_v28  ;;  %v3143_v21 = vand.u32 4294901760, %v2514_v47  ;;  %v3144_v60 = vand.u32 4294901760, %v2516_v48  ;;  %v3145_v28 = vand.u32 4294901760, %v2520_v53  ;;  %2159 = vmatpush3.bf16.msra.mxu0 %v2158_v11  ;;  %2016 = vmatprep.subr.bf16.mxu1 %v3102_v63 }
  0x40   :  { %3134 = vst [vmem:[#allocation22_spill] sm:$0xff] %v2793_v17  ;;  %v2805_v52 = vpack.c.bf16 %v3139_v6, %v3138_v9  ;;  %v2811_v44 = vpack.c.bf16 %v3142_v30, %v3141_v10  ;;  %v3146_v24 = vand.u32 4294901760, %v2527_v57  ;;  %v3147_v9 = vand.u32 4294901760, %v2555_v8  ;;  %2160 = vmatprep.subr.bf16.mxu0 %v3102_v63 }
  0x41   :  { %3137 = vst [vmem:[#allocation23_spill] sm:$0xff] %v2799_v2  ;;  %v2817_v17 = vpack.c.bf16 %v3144_v60, %v3143_v21  ;;  %v2829_v10 = vpack.c.bf16 %v258_v56, %v251_v13  ;;  %v2831_v30 = vpack.c.bf16 %v899_v35, %v892_v41  ;;  %v2161_v21 = vpack.c.bf16 %v901_v3, %v894_v14  ;;  %v3166_v35 = vld [vmem:[#allocation17_spill] sm:$0xff] }
  0x42   :  { %3140 = vst [vmem:[#allocation24_spill] sm:$0xff] %v2805_v52  ;;  %v2823_v2 = vpack.c.bf16 %v3146_v24, %v3145_v28  ;;  %v2827_v6 = vpack.c.bf16 %v885_v45, %v3147_v9  ;;  %v2017_v52 = vpack.c.bf16 %v260_v4, %v253_v42  ;;  %v2020_v60 = vpack.c.bf16 %v2378_v33, %v2376_v32 }
  0x43   :  { %2162 = vmatpush3.bf16.msra.mxu0 %v2161_v21  ;;  %v2164_v45 = vpack.c.bf16 %v2388_v37, %v2380_v34  ;;  %v2023_v41 = vpack.c.bf16 %v2392_v39, %v2390_v38  ;;  %v2167_v32 = vpack.c.bf16 %v2412_v49, %v2401_v43  ;;  %v2026_v33 = vpack.c.bf16 %v2423_v54, %v2415_v50 }
  0x44   :  { %2018 = vmatpush3.bf16.msra.mxu1 %v2017_v52  ;;  %2163 = vmatprep.subr.bf16.mxu0 %v3102_v63  ;;  %v2170_v34 = vpack.c.bf16 %v2436_v61, %v2425_v55  ;;  %v2029_v37 = vpack.c.bf16 %v2449_v5, %v2438_v62  ;;  %v2173_v38 = vpack.c.bf16 %v2466_v15, %v2453_v7  ;;  %v3148_v55 = vld [vmem:[#allocation20_spill] sm:$0xff]  ;;  %v3149_v7 = vld [vmem:[#allocation18_spill] sm:$0xff] }
  0x45   :  { %2019 = vmatprep.subr.bf16.mxu1 %v3102_v63  ;;  %v2032_v39 = vpack.c.bf16 %v2472_v23, %v2470_v20  ;;  %v2176_v43 = vpack.c.bf16 %v2479_v26, %v2476_v25  ;;  %v2035_v49 = vpack.c.bf16 %v2494_v40, %v2492_v36  ;;  %v2179_v50 = vpack.c.bf16 %v2516_v48, %v2514_v47  ;;  %v3150_v15 = vld [vmem:[#allocation2_spill] sm:$0xff]  ;;  %v3151_v20 = vld [vmem:[#allocation19_spill] sm:$0xff]  ;;  %v3153_v23 = vld [vmem:[#allocation4_spill] sm:$0xff] }
  0x46   :  { %1829 = vmatmul.mubr.f32.vlgmr.msra.gmra.mrb[0].mxu0 %v2592_v27  ;;  %v2038_v54 = vpack.c.bf16 %v2527_v57, %v2520_v53  ;;  %v2182_v61 = vpack.c.bf16 %v3148_v55, %v2555_v8  ;;  %v2041_v62 = vpack.c.bf16 %v2670_v16, %v2665_v0  ;;  %v2185_v5 = vpack.c.bf16 %v2701_v12, %v2691_v29  ;;  %v3152_v16 = vld [vmem:[#allocation3_spill] sm:$0xff]  ;;  %v3154_v25 = vld [vmem:[#allocation5_spill] sm:$0xff]  ;;  %v3155_v26 = vld [vmem:[#allocation6_spill] sm:$0xff] }
  0x47   :  { %1619 = vmatmul.mubr.f32.vlgmr.msra.gmra.mrb[0].mxu1 %v2557_v58  ;;  %2165 = vmatpush3.bf16.msra.mxu0 %v2164_v45  ;;  %v3156_v36 = vld [vmem:[#allocation7_spill] sm:$0xff]  ;;  %v3157_v40 = vld [vmem:[#allocation8_spill] sm:$0xff]  ;;  %v3158_v47 = vld [vmem:[#allocation9_spill] sm:$0xff]  ;;  %v3167_v13 = vand.u32 4294901760, %v3149_v7  ;;  %v3168_v56 = vand.u32 4294901760, %v3151_v20 }
  0x48   :  { %2021 = vmatpush3.bf16.msra.mxu1 %v2020_v60  ;;  %2166 = vmatprep.subr.bf16.mxu0 %v3102_v63  ;;  %v3159_v48 = vld [vmem:[#allocation10_spill] sm:$0xff]  ;;  %v3160_v53 = vld [vmem:[#allocation11_spill] sm:$0xff]  ;;  %v3161_v57 = vld [vmem:[#allocation12_spill] sm:$0xff] }
  0x49   :  { %2022 = vmatprep.subr.bf16.mxu1 %v3102_v63  ;;  %1653 = vmatprep.mubr.msk.f32.mxu1 %vm2284_vm0, %v3110_v51  ;;  %v3162_v8 = vld [vmem:[#allocation13_spill] sm:$0xff]  ;;  %v3163_v0 = vld [vmem:[#allocation14_spill] sm:$0xff]  ;;  %v3164_v29 = vld [vmem:[#allocation15_spill] sm:$0xff] }
  0x4a   :  { %1863 = vmatprep.mubr.msk.f32.mxu0 %vm2284_vm0, %v3110_v51  ;;  %v3165_v12 = vld [vmem:[#allocation16_spill] sm:$0xff]  ;;  %v3169_v19 = vld [vmem:[#allocation21_spill] sm:$0xff]  ;;  %v3170_v11 = vld [vmem:[#allocation22_spill] sm:$0xff] }
  0x4b   :  { %2168 = vmatpush3.bf16.msra.mxu0 %v2167_v32  ;;  %v3171_v42 = vld [vmem:[#allocation23_spill] sm:$0xff]  ;;  %v3172_v4 = vld [vmem:[#allocation24_spill] sm:$0xff] }
  0x4c   :  { %2024 = vmatpush3.bf16.msra.mxu1 %v2023_v41  ;;  %2169 = vmatprep.subr.bf16.mxu0 %v3102_v63 }
  0x4d   :  { %2025 = vmatprep.subr.bf16.mxu1 %v3102_v63 }
  0x4f   :  { %2171 = vmatpush3.bf16.msra.mxu0 %v2170_v34 }
  0x50   :  { %2027 = vmatpush3.bf16.msra.mxu1 %v2026_v33  ;;  %2172 = vmatprep.subr.bf16.mxu0 %v3102_v63 }
  0x51   :  { %2028 = vmatprep.subr.bf16.mxu1 %v3102_v63 }
  0x53   :  { %2174 = vmatpush3.bf16.msra.mxu0 %v2173_v38 }
  0x54   :  { %2030 = vmatpush3.bf16.msra.mxu1 %v2029_v37  ;;  %2175 = vmatprep.subr.bf16.mxu0 %v3102_v63 }
  0x55   :  { %2031 = vmatprep.subr.bf16.mxu1 %v3102_v63 }
  0x57   :  { %2177 = vmatpush3.bf16.msra.mxu0 %v2176_v43 }
  0x58   :  { %2033 = vmatpush3.bf16.msra.mxu1 %v2032_v39  ;;  %2178 = vmatprep.subr.bf16.mxu0 %v3102_v63 }
  0x59   :  { %2034 = vmatprep.subr.bf16.mxu1 %v3102_v63 }
  0x5b   :  { %2180 = vmatpush3.bf16.msra.mxu0 %v2179_v50 }
  0x5c   :  { %2036 = vmatpush3.bf16.msra.mxu1 %v2035_v49  ;;  %2181 = vmatprep.subr.bf16.mxu0 %v3102_v63 }
  0x5d   :  { %2037 = vmatprep.subr.bf16.mxu1 %v3102_v63 }
  0x5f   :  { %2183 = vmatpush3.bf16.msra.mxu0 %v2182_v61 }
  0x60   :  { %2039 = vmatpush3.bf16.msra.mxu1 %v2038_v54  ;;  %2184 = vmatprep.subr.bf16.mxu0 %v3102_v63 }
  0x61   :  { %2040 = vmatprep.subr.bf16.mxu1 %v3102_v63 }
  0x63   :  { %2186 = vmatpush3.bf16.msra.mxu0 %v2185_v5 }
  0x64   :  { %2042 = vmatpush3.bf16.msra.mxu1 %v2041_v62  ;;  %2187 = vmatprep.subr.bf16.mxu0 %v3102_v63 }
  0x65   :  { %2043 = vmatprep.subr.bf16.mxu1 %v3102_v63 }
  0x66   :  { %1864 = vmatmul.mubr.f32.vlgmr.msra.gmra.mrb[0].mxu0 %v3151_v20 }
  0x67   :  { %1654 = vmatmul.mubr.f32.vlgmr.msra.gmra.mrb[0].mxu1 %v3149_v7  ;;  %2189 = vmatpush3.bf16.msra.mxu0 %v3152_v16 }
  0x68   :  { %2045 = vmatpush3.bf16.msra.mxu1 %v3150_v15  ;;  %2190 = vmatprep.subr.bf16.mxu0 %v3102_v63 }
  0x69   :  { %2046 = vmatprep.subr.bf16.mxu1 %v3102_v63  ;;  %1688 = vmatprep.mubr.msk.f32.mxu1 %vm2284_vm0, %v3110_v51 }
  0x6a   :  { %1898 = vmatprep.mubr.msk.f32.mxu0 %vm2284_vm0, %v3110_v51 }
  0x6b   :  { %2192 = vmatpush3.bf16.msra.mxu0 %v3154_v25 }
  0x6c   :  { %2048 = vmatpush3.bf16.msra.mxu1 %v3153_v23  ;;  %2193 = vmatprep.subr.bf16.mxu0 %v3102_v63 }
  0x6d   :  { %2049 = vmatprep.subr.bf16.mxu1 %v3102_v63 }
  0x6f   :  { %2195 = vmatpush3.bf16.msra.mxu0 %v3156_v36 }
  0x70   :  { %2051 = vmatpush3.bf16.msra.mxu1 %v3155_v26  ;;  %2196 = vmatprep.subr.bf16.mxu0 %v3102_v63 }
  0x71   :  { %2052 = vmatprep.subr.bf16.mxu1 %v3102_v63 }
  0x73   :  { %2198 = vmatpush3.bf16.msra.mxu0 %v3158_v47 }
  0x74   :  { %2054 = vmatpush3.bf16.msra.mxu1 %v3157_v40  ;;  %2199 = vmatprep.subr.bf16.mxu0 %v3102_v63 }
  0x75   :  { %2055 = vmatprep.subr.bf16.mxu1 %v3102_v63 }
  0x77   :  { %2201 = vmatpush3.bf16.msra.mxu0 %v3160_v53 }
  0x78   :  { %2057 = vmatpush3.bf16.msra.mxu1 %v3159_v48  ;;  %2202 = vmatprep.subr.bf16.mxu0 %v3102_v63 }
  0x79   :  { %2058 = vmatprep.subr.bf16.mxu1 %v3102_v63 }
  0x7b   :  { %2204 = vmatpush3.bf16.msra.mxu0 %v3162_v8 }
  0x7c   :  { %2060 = vmatpush3.bf16.msra.mxu1 %v3161_v57  ;;  %2205 = vmatprep.subr.bf16.mxu0 %v3102_v63 }
  0x7d   :  { %2061 = vmatprep.subr.bf16.mxu1 %v3102_v63 }
  0x7f   :  { %2207 = vmatpush3.bf16.msra.mxu0 %v3164_v29 }
  0x80   :  { %2063 = vmatpush3.bf16.msra.mxu1 %v3163_v0  ;;  %2208 = vmatprep.subr.bf16.mxu0 %v3102_v63 }
  0x81   :  { %2064 = vmatprep.subr.bf16.mxu1 %v3102_v63 }
  0x83   :  { %2210 = vmatpush3.bf16.msra.mxu0 %v3166_v35 }
  0x84   :  { %2066 = vmatpush3.bf16.msra.mxu1 %v3165_v12  ;;  %2211 = vmatprep.subr.bf16.mxu0 %v3102_v63 }
  0x85   :  { %2067 = vmatprep.subr.bf16.mxu1 %v3102_v63 }
  0x86   :  { %1899 = vmatmul.mubr.f32.vlgmr.msra.gmra.mrb[0].mxu0 %v3168_v56 }
  0x87   :  { %1689 = vmatmul.mubr.f32.vlgmr.msra.gmra.mrb[0].mxu1 %v3167_v13  ;;  %2213 = vmatpush3.bf16.msra.mxu0 %v2755_v22 }
  0x88   :  { %2069 = vmatpush3.bf16.msra.mxu1 %v2749_v46  ;;  %2214 = vmatprep.subr.bf16.mxu0 %v3102_v63 }
  0x89   :  { %2070 = vmatprep.subr.bf16.mxu1 %v3102_v63  ;;  %1723 = vmatprep.mubr.msk.f32.mxu1 %vm2284_vm0, %v3110_v51 }
  0x8a   :  { %1933 = vmatprep.mubr.msk.f32.mxu0 %vm2284_vm0, %v3110_v51 }
  0x8b   :  { %2216 = vmatpush3.bf16.msra.mxu0 %v2768_v59 }
  0x8c   :  { %2072 = vmatpush3.bf16.msra.mxu1 %v2761_v31  ;;  %2217 = vmatprep.subr.bf16.mxu0 %v3102_v63 }
  0x8d   :  { %2073 = vmatprep.subr.bf16.mxu1 %v3102_v63 }
  0x8f   :  { %2219 = vmatpush3.bf16.msra.mxu0 %v2780_v18 }
  0x90   :  { %2075 = vmatpush3.bf16.msra.mxu1 %v2774_v1  ;;  %2220 = vmatprep.subr.bf16.mxu0 %v3102_v63 }
  0x91   :  { %2076 = vmatprep.subr.bf16.mxu1 %v3102_v63 }
  0x93   :  { %2222 = vmatpush3.bf16.msra.mxu0 %v3170_v11 }
  0x94   :  { %2078 = vmatpush3.bf16.msra.mxu1 %v3169_v19  ;;  %2223 = vmatprep.subr.bf16.mxu0 %v3102_v63 }
  0x95   :  { %2079 = vmatprep.subr.bf16.mxu1 %v3102_v63 }
  0x97   :  { %2225 = vmatpush3.bf16.msra.mxu0 %v3172_v4 }
  0x98   :  { %2081 = vmatpush3.bf16.msra.mxu1 %v3171_v42  ;;  %2226 = vmatprep.subr.bf16.mxu0 %v3102_v63 }
  0x99   :  { %2082 = vmatprep.subr.bf16.mxu1 %v3102_v63 }
  0x9b   :  { %2228 = vmatpush3.bf16.msra.mxu0 %v2817_v17 }
  0x9c   :  { %2084 = vmatpush3.bf16.msra.mxu1 %v2811_v44  ;;  %2229 = vmatprep.subr.bf16.mxu0 %v3102_v63 }
  0x9d   :  { %2085 = vmatprep.subr.bf16.mxu1 %v3102_v63 }
  0x9f   :  { %2231 = vmatpush3.bf16.msra.mxu0 %v2827_v6 }
  0xa0   :  { %2087 = vmatpush3.bf16.msra.mxu1 %v2823_v2  ;;  %2232 = vmatprep.subr.bf16.mxu0 %v3102_v63 }
  0xa1   :  { %2088 = vmatprep.subr.bf16.mxu1 %v3102_v63 }
  0xa3   :  { %2234 = vmatpush3.bf16.msra.mxu0 %v2831_v30 }
  0xa4   :  { %2090 = vmatpush3.bf16.msra.mxu1 %v2829_v10  ;;  %2235 = vmatprep.subr.bf16.mxu0 %v3102_v63 }
  0xa5   :  { %2091 = vmatprep.subr.bf16.mxu1 %v3102_v63 }
  0xa6   :  { %1934 = vmatmul.mubr.f32.vlgmr.msra.gmra.mrb[0].mxu0 %v2592_v27 }
  0xa7   :  { %1724 = vmatmul.mubr.f32.vlgmr.msra.gmra.mrb[0].mxu1 %v2557_v58  ;;  %2237 = vmatpush3.bf16.msra.mxu0 %v3152_v16 }
  0xa8   :  { %2093 = vmatpush3.bf16.msra.mxu1 %v3150_v15  ;;  %2238 = vmatprep.subr.bf16.mxu0 %v3102_v63 }
  0xa9   :  { %2094 = vmatprep.subr.bf16.mxu1 %v3102_v63  ;;  %1758 = vmatprep.mubr.msk.f32.mxu1 %vm2284_vm0, %v3110_v51 }
  0xaa   :  { %1968 = vmatprep.mubr.msk.f32.mxu0 %vm2284_vm0, %v3110_v51 }
  0xab   :  { %2240 = vmatpush3.bf16.msra.mxu0 %v3154_v25 }
  0xac   :  { %2096 = vmatpush3.bf16.msra.mxu1 %v3153_v23  ;;  %2241 = vmatprep.subr.bf16.mxu0 %v3102_v63 }
  0xad   :  { %2097 = vmatprep.subr.bf16.mxu1 %v3102_v63 }
  0xaf   :  { %2243 = vmatpush3.bf16.msra.mxu0 %v3156_v36 }
  0xb0   :  { %2099 = vmatpush3.bf16.msra.mxu1 %v3155_v26  ;;  %2244 = vmatprep.subr.bf16.mxu0 %v3102_v63 }
  0xb1   :  { %2100 = vmatprep.subr.bf16.mxu1 %v3102_v63 }
  0xb3   :  { %2246 = vmatpush3.bf16.msra.mxu0 %v3158_v47 }
  0xb4   :  { %2102 = vmatpush3.bf16.msra.mxu1 %v3157_v40  ;;  %2247 = vmatprep.subr.bf16.mxu0 %v3102_v63 }
  0xb5   :  { %2103 = vmatprep.subr.bf16.mxu1 %v3102_v63 }
  0xb7   :  { %2249 = vmatpush3.bf16.msra.mxu0 %v3160_v53 }
  0xb8   :  { %2105 = vmatpush3.bf16.msra.mxu1 %v3159_v48  ;;  %2250 = vmatprep.subr.bf16.mxu0 %v3102_v63 }
  0xb9   :  { %2106 = vmatprep.subr.bf16.mxu1 %v3102_v63 }
  0xbb   :  { %2252 = vmatpush3.bf16.msra.mxu0 %v3162_v8 }
  0xbc   :  { %2108 = vmatpush3.bf16.msra.mxu1 %v3161_v57  ;;  %2253 = vmatprep.subr.bf16.mxu0 %v3102_v63 }
  0xbd   :  { %2109 = vmatprep.subr.bf16.mxu1 %v3102_v63 }
  0xbf   :  { %2255 = vmatpush3.bf16.msra.mxu0 %v3164_v29 }
  0xc0   :  { %2111 = vmatpush3.bf16.msra.mxu1 %v3163_v0  ;;  %2256 = vmatprep.subr.bf16.mxu0 %v3102_v63 }
  0xc1   :  { %2112 = vmatprep.subr.bf16.mxu1 %v3102_v63 }
  0xc3   :  { %2258 = vmatpush3.bf16.msra.mxu0 %v3166_v35 }
  0xc4   :  { %2114 = vmatpush3.bf16.msra.mxu1 %v3165_v12 }
  0xc6   :  { %1969 = vmatmul.mubr.f32.vlgmr.msra.gmra.mrb[0].mxu0 %v2592_v27 }
  0xc7   :  { %1759 = vmatmul.mubr.f32.vlgmr.msra.gmra.mrb[0].mxu1 %v2557_v58 }
 0x199   :  { %v1337_v14 = vpop.f32.mrb[0].mxu0 }
 0x19a   :  { %v696_v51 = vpop.f32.mrb[0].mxu1  ;;  %v1970_v31 = vpop.f32.mrb[1].mxu0 }
 0x19b   :  { %v1760_v46 = vpop.f32.mrb[1].mxu1  ;;  %v2259_v22 = vadd.f32 %v1337_v14, %v696_v51 }
 0x19d   :  { %1342 = vst.msk [vmem:[%s3015_s5] sm:$0xff] %vm1341_vm1, %v2259_v22 }

</bundles_post_ra>
